<compile_context>
chip_gen: v5e
topology: v5e:2x2
jax: 0.10.0
libtpu: 0.0.40
codegen_flags: <defaults>
</compile_context>

<pallas_src>
import jax
import jax.numpy as jnp
from jax.experimental import pallas as pl
from jax.experimental.pallas import tpu as pltpu

IN_FEATURES = 500
OUT_FEATURES = 87
DROPOUT_P = 0.5          # F.dropout default

K_PAD = 512              # 500 -> 512 (4 x 128): unmasked loads, clean MXU K
N_PAD = 128              # 87  -> 128: lane-dense output stores
MAX_TM = 512             # batch-tile rows (fits comfortably in v7x's 64 MiB VMEM)


def _round_up(x, m):
    return (x + m - 1) // m * m


def _eval_kernel(x_ref, w_ref, b_ref, o_ref):
    """ReLU -> (dropout == identity in eval) -> Linear, fused per batch tile."""
    x = jnp.maximum(x_ref[...], 0.0)                       # ReLU in f32 (VPU)
    acc = jnp.dot(x.astype(jnp.bfloat16), w_ref[...],      # bf16 MXU, f32 accumulate
                  preferred_element_type=jnp.float32)
    o_ref[...] = (acc + b_ref[...]).astype(o_ref.dtype)


def _train_kernel(x_ref, m_ref, w_ref, b_ref, o_ref):
    """ReLU -> inverted dropout (precomputed mask) -> Linear, fused per tile."""
    x = jnp.maximum(x_ref[...], 0.0)                       # ReLU in f32
    x = x * m_ref[...].astype(jnp.float32)                 # mask in {0, 1/(1-p)}
    acc = jnp.dot(x.astype(jnp.bfloat16), w_ref[...],
                  preferred_element_type=jnp.float32)
    o_ref[...] = (acc + b_ref[...]).astype(o_ref.dtype)


def lenet_forward(x, w_t, b, *, training=False, rng_key=None):
    """x: (B, 500) f32, w_t: (512, 128) bf16 (padded W.T), b: (1, 128) f32
    -> (B, 87) f32."""
    B = x.shape[0]
    tm = min(MAX_TM, _round_up(B, 8))
    b_pad = _round_up(B, tm)
    grid = (b_pad // tm,)

    # Pad once in the wrapper: batch -> multiple of tm, features 500 -> 512.
    x_p = jnp.zeros((b_pad, K_PAD), jnp.float32).at[:B, :IN_FEATURES].set(x)

    x_spec = pl.BlockSpec((tm, K_PAD), lambda i: (i, 0))
    w_spec = pl.BlockSpec((K_PAD, N_PAD), lambda i: (0, 0))   # VMEM-resident
    b_spec = pl.BlockSpec((1, N_PAD), lambda i: (0, 0))       # VMEM-resident
    o_spec = pl.BlockSpec((tm, N_PAD), lambda i: (i, 0))
    out_shape = jax.ShapeDtypeStruct((b_pad, N_PAD), jnp.float32)

    cparams = pltpu.CompilerParams(dimension_semantics=("parallel",))

    base_bytes = x_p.size * 4 + w_t.size * 2 + b.size * 4 + b_pad * N_PAD * 4

    if not training:
        cost = pl.CostEstimate(flops=2 * b_pad * K_PAD * N_PAD,
                               transcendentals=0,
                               bytes_accessed=base_bytes)
        out = pl.pallas_call(
            _eval_kernel,
            out_shape=out_shape,
            grid=grid,
            in_specs=[x_spec, w_spec, b_spec],
            out_specs=o_spec,
            compiler_params=cparams,
            cost_estimate=cost,
        )(x_p, w_t, b)
    else:
        if rng_key is None:
            rng_key = jax.random.PRNGKey(0)
        # TODO(synk): in-kernel pltpu.prng_* has no interpret/CPU lowering and
        # cannot match PyTorch's RNG stream anyway; the Bernoulli keep-mask is
        # generated with jax.random and streamed in per batch tile instead.
        keep = jax.random.bernoulli(rng_key, 1.0 - DROPOUT_P, (b_pad, K_PAD))
        scale = jnp.bfloat16(1.0 / (1.0 - DROPOUT_P))          # 2.0, exact in bf16
        mask = keep.astype(jnp.bfloat16) * scale
        m_spec = pl.BlockSpec((tm, K_PAD), lambda i: (i, 0))
        cost = pl.CostEstimate(flops=2 * b_pad * K_PAD * N_PAD,
                               transcendentals=0,
                               bytes_accessed=base_bytes + mask.size * 2)
        out = pl.pallas_call(
            _train_kernel,
            out_shape=out_shape,
            grid=grid,
            in_specs=[x_spec, m_spec, w_spec, b_spec],
            out_specs=o_spec,
            compiler_params=cparams,
            cost_estimate=cost,
        )(x_p, mask, w_t, b)

    return out[:B, :OUT_FEATURES]


def init_params(key):
    """nn.Linear(500, 87)-style init; returns padded, kernel-ready params."""
    kw, kb = jax.random.split(key)
    bound = 1.0 / jnp.sqrt(IN_FEATURES)
    # PyTorch stores weight as (out, in); keep the transpose for the kernel.
    w = jax.random.uniform(kw, (OUT_FEATURES, IN_FEATURES), jnp.float32,
                           -bound, bound)
    bias = jax.random.uniform(kb, (OUT_FEATURES,), jnp.float32, -bound, bound)
    # Pad W.T (500, 87) -> (512, 128) with zeros, store bf16 for the MXU.
    w_t = jnp.zeros((K_PAD, N_PAD), jnp.float32).at[:IN_FEATURES,
                                                    :OUT_FEATURES].set(w.T)
    w_t = w_t.astype(jnp.bfloat16)
    b_pad = jnp.zeros((1, N_PAD), jnp.float32).at[0, :OUT_FEATURES].set(bias)
    return w_t, b_pad


if __name__ == "__main__":
    key = jax.random.PRNGKey(0)
    kx, kp, kd = jax.random.split(key, 3)

    B = 8  # small batch
    x = jax.random.normal(kx, (B, IN_FEATURES), jnp.float32)
    w_t, b = init_params(kp)

    # Eval-mode forward (dropout is identity) — deterministic, check vs reference
    # computed with the same bf16-rounded operands and f32 accumulation.
    out_eval = jax.block_until_ready(lenet_forward(x, w_t, b, training=False))
    assert out_eval.shape == (B, OUT_FEATURES)
    x_eff = jnp.maximum(x, 0.0).astype(jnp.bfloat16).astype(jnp.float32)
    w_eff = w_t[:IN_FEATURES, :OUT_FEATURES].astype(jnp.float32)
    ref = x_eff @ w_eff + b[:, :OUT_FEATURES]
    assert jnp.allclose(out_eval, ref, atol=2e-2, rtol=2e-2), "mismatch vs reference"

    # Training-mode forward (p=0.5 inverted dropout via a precomputed mask).
    out_train = jax.block_until_ready(
        lenet_forward(x, w_t, b, training=True, rng_key=kd))
    assert out_train.shape == (B, OUT_FEATURES)
    assert bool(jnp.all(jnp.isfinite(out_train)))

    print("KERNEL_OK")
</pallas_src>

<mosaic_0001>
module attributes {stable_mosaic.version = 11 : i64} {
  func.func @_eval_kernel(%arg0: i32, %arg1: memref<8x512xf32, #tpu.memory_space<vmem>>, %arg2: memref<512x128xbf16, #tpu.memory_space<vmem>>, %arg3: memref<1x128xf32, #tpu.memory_space<vmem>>, %arg4: memref<8x128xf32, #tpu.memory_space<vmem>>) attributes {dimension_semantics = [#tpu.dimension_semantics<parallel>], iteration_bounds = array<i64: 1>, scalar_prefetch = 0 : i64, scratch_operands = 0 : i64, tpu.core_type = #tpu.core_type<tc>, window_params = [{transform_indices = @transform_0, window_bounds = array<i64: 8, 512>}, {pipeline_mode = #tpu.pipeline_mode<synchronous>, transform_indices = @transform_1, window_bounds = array<i64: 512, 128>}, {pipeline_mode = #tpu.pipeline_mode<synchronous>, transform_indices = @transform_2, window_bounds = array<i64: 1, 128>}, {transform_indices = @transform_3, window_bounds = array<i64: 8, 128>}]} {
    %c0 = arith.constant 0 : index
    %c0_0 = arith.constant 0 : index
    %0 = vector.load %arg1[%c0, %c0_0] : memref<8x512xf32, #tpu.memory_space<vmem>>, vector<8x512xf32>
    %cst = arith.constant 0.000000e+00 : f32
    %1 = vector.broadcast %cst : f32 to vector<8x512xf32>
    %2 = arith.maximumf %0, %1 : vector<8x512xf32>
    %3 = arith.truncf %2 : vector<8x512xf32> to vector<8x512xbf16>
    %c0_1 = arith.constant 0 : index
    %c0_2 = arith.constant 0 : index
    %4 = vector.load %arg2[%c0_1, %c0_2] : memref<512x128xbf16, #tpu.memory_space<vmem>>, vector<512x128xbf16>
    %cst_3 = arith.constant dense<0.000000e+00> : vector<8x128xf32>
    %5 = tpu.matmul %3, %4, %cst_3 {dimension_numbers = #tpu.dot_dimension_numbers<[1], [0], [0], [1], [0, 0, 1, 1], [], []>} : vector<8x512xbf16>, vector<512x128xbf16>, vector<8x128xf32> -> vector<8x128xf32>
    %c0_4 = arith.constant 0 : index
    %c0_5 = arith.constant 0 : index
    %6 = vector.load %arg3[%c0_4, %c0_5] : memref<1x128xf32, #tpu.memory_space<vmem>>, vector<1x128xf32>
    %7 = vector.broadcast %6 : vector<1x128xf32> to vector<8x128xf32>
    %8 = arith.addf %5, %7 : vector<8x128xf32>
    %c0_6 = arith.constant 0 : index
    %c0_7 = arith.constant 0 : index
    %9 = vector.load %arg4[%c0_6, %c0_7] : memref<8x128xf32, #tpu.memory_space<vmem>>, vector<8x128xf32>
    tpu.vector_store %arg4[%c0_6, %c0_7], %8 {strides = array<i32>} : memref<8x128xf32, #tpu.memory_space<vmem>>, vector<8x128xf32>,
    return
  }
  func.func @transform_0(%arg0: i32) -> (i32, i32) {
    %c0_i32 = arith.constant 0 : i32
    %c0_i32_0 = arith.constant 0 : i32
    return %arg0, %c0_i32 : i32, i32
  }
  func.func @transform_1(%arg0: i32) -> (i32, i32) {
    %c0_i32 = arith.constant 0 : i32
    %c0_i32_0 = arith.constant 0 : i32
    %c0_i32_1 = arith.constant 0 : i32
    return %c0_i32, %c0_i32_0 : i32, i32
  }
  func.func @transform_2(%arg0: i32) -> (i32, i32) {
    %c0_i32 = arith.constant 0 : i32
    %c0_i32_0 = arith.constant 0 : i32
    %c0_i32_1 = arith.constant 0 : i32
    return %c0_i32, %c0_i32_0 : i32, i32
  }
  func.func @transform_3(%arg0: i32) -> (i32, i32) {
    %c0_i32 = arith.constant 0 : i32
    %c0_i32_0 = arith.constant 0 : i32
    return %arg0, %c0_i32 : i32, i32
  }
}

</mosaic_0001>

<bundles_post_ra>
// kernel: tpu_custom_call.1
= control target key start
LH: loop header
LB: loop body
LE: loop exit
PB: predicated region body
PF: predicated region fallthrough
CT: control target
= control target key end

     0   :  { %8 = vsyncpa [#allocation3], 0  ;;  %s669_s0 = inlined_call_operand.hbm [shape: f32[8,512], index: 0, kind: input, shape index: {}]   ;;  %s670_s1 = inlined_call_operand.hbm [shape: bf16[512,128], index: 1, kind: input, shape index: {}]   ;;  %s671_s2 = inlined_call_operand.vmem [shape: f32[1,128], index: 2, kind: input, shape index: {}]   ;;  %s672_s3 = inlined_call_operand.hbm [shape: f32[8,128], index: 3, kind: output, shape index: {}]  }
   0x1   :  { %9 = vsyncpa [#allocation6], 0 }
   0x2   :  { %10 = vsyncpa [#allocation4], 0  ;;  %s16_s14 = sshll.u32 %s669_s0, 4  ;;  %s632_s15 = smov [#allocation2]   ;;  %s17_s14 = int_to_ptr.hbm [resolvable:$true] %s16_s14 }
   0x3   :  { %s18_s16 = sshll.u32 %s632_s15, 4  ;;  %s26_s19 = sshll.u32 %s670_s1, 4  ;;  %s19_s16 = int_to_ptr.vmem [resolvable:$true] %s18_s16  ;;  %s27_s19 = int_to_ptr.hbm [resolvable:$true] %s26_s19 }
   0x4   :  { %21 = dma.hbm_to_vmem [thread:$0]  %s17_s14, 512, %s19_s16, [#allocation3]  }
   0x5   :  { %s633_s20 = smov [#allocation5]   ;;  %s634_s22 = smov 64  }
   0x6   :  { %s28_s21 = sshll.u32 %s633_s20, 4  ;;  %s635_s23 = smov 4   ;;  %s29_s21 = int_to_ptr.vmem [resolvable:$true] %s28_s21 }
   0x7   :  { %34 = dma.hbm_to_vmem [thread:$0]  %s27_s19, 4096, %s29_s21, [#allocation6], %s634_s22, %s634_s22, %s635_s23  }
   0x8   :  { %626 = dma.done.wait [#allocation3], 512  }
   0x9   :  { %627 = vsyncadd [#allocation3], 4294966784 }
   0xa   :  { %628 = dma.done.wait [#allocation6], 4096  }
   0xb   :  { %629 = vsyncadd [#allocation6], 4294963200  ;;  %v523_v0 = vld [vmem:[#allocation5 + $0x38] sm:$0xff]  ;;  %v522_v4 = vld [vmem:[#allocation5 + $0x30] sm:$0xff]  ;;  %s636_s24 = smov [#allocation7]   ;;  %s377_s28 = sshll.u32 %s672_s3, 4  ;;  %s378_s28 = int_to_ptr.hbm [resolvable:$true] %s377_s28 }
   0xc   :  { %v531_v1 = vld [vmem:[#allocation5 + $0x78] sm:$0xff]  ;;  %317 = vmatpush.bf16.msra.mxu0 %v523_v0  ;;  %v530_v5 = vld [vmem:[#allocation5 + $0x70] sm:$0xff]  ;;  %v521_v8 = vld [vmem:[#allocation5 + $0x28] sm:$0xff]  ;;  %s375_s25 = sshll.u32 %s636_s24, 4  ;;  %s376_s25 = int_to_ptr.vmem [resolvable:$true] %s375_s25 }
   0xd   :  { %v539_v2 = vld [vmem:[#allocation5 + $0xb8] sm:$0xff]  ;;  %330 = vmatpush.bf16.msra.mxu1 %v531_v1  ;;  %v538_v6 = vld [vmem:[#allocation5 + $0xb0] sm:$0xff]  ;;  %v529_v9 = vld [vmem:[#allocation5 + $0x68] sm:$0xff] }
   0xe   :  { %v547_v3 = vld [vmem:[#allocation5 + $0xf8] sm:$0xff]  ;;  %343 = vmatpush.bf16.msra.mxu2 %v539_v2  ;;  %v546_v7 = vld [vmem:[#allocation5 + $0xf0] sm:$0xff]  ;;  %v537_v10 = vld [vmem:[#allocation5 + $0xa8] sm:$0xff] }
   0xf   :  { %356 = vmatpush.bf16.msra.mxu3 %v547_v3  ;;  %v545_v11 = vld [vmem:[#allocation5 + $0xe8] sm:$0xff]  ;;  %v520_v12 = vld [vmem:[#allocation5 + $0x20] sm:$0xff]  ;;  %v519_v16 = vld [vmem:[#allocation5 + $0x18] sm:$0xff] }
  0x10   :  { %318 = vmatpush.bf16.msra.mxu0 %v522_v4  ;;  %v528_v13 = vld [vmem:[#allocation5 + $0x60] sm:$0xff]  ;;  %v527_v17 = vld [vmem:[#allocation5 + $0x58] sm:$0xff]  ;;  %v518_v20 = vld [vmem:[#allocation5 + $0x10] sm:$0xff] }
  0x11   :  { %331 = vmatpush.bf16.msra.mxu1 %v530_v5  ;;  %v536_v14 = vld [vmem:[#allocation5 + $0xa0] sm:$0xff]  ;;  %v535_v18 = vld [vmem:[#allocation5 + $0x98] sm:$0xff]  ;;  %v526_v21 = vld [vmem:[#allocation5 + $0x50] sm:$0xff] }
  0x12   :  { %344 = vmatpush.bf16.msra.mxu2 %v538_v6  ;;  %v544_v15 = vld [vmem:[#allocation5 + $0xe0] sm:$0xff]  ;;  %v543_v19 = vld [vmem:[#allocation5 + $0xd8] sm:$0xff]  ;;  %v534_v22 = vld [vmem:[#allocation5 + $0x90] sm:$0xff] }
  0x13   :  { %357 = vmatpush.bf16.msra.mxu3 %v546_v7  ;;  %v542_v23 = vld [vmem:[#allocation5 + $0xd0] sm:$0xff]  ;;  %v517_v24 = vld [vmem:[#allocation5 + $0x8] sm:$0xff]  ;;  %v45_v27 = vld [vmem:[#allocation2] sm:$0xff] }
  0x14   :  { %319 = vmatpush.bf16.msra.mxu0 %v521_v8  ;;  %v525_v25 = vld [vmem:[#allocation5 + $0x48] sm:$0xff]  ;;  %v47_v30 = vld [vmem:[#allocation2 + $0x10] sm:$0xff]  ;;  %v48_v31 = vld [vmem:[#allocation2 + $0x18] sm:$0xff]  ;;  %v49_v32 = vmax.f32 %v45_v27, 0.0 }
  0x15   :  { %332 = vmatpush.bf16.msra.mxu1 %v529_v9  ;;  %v533_v26 = vld [vmem:[#allocation5 + $0x88] sm:$0xff]  ;;  %v516_v34 = vld [vmem:[#allocation5] sm:$0xff]  ;;  %v51_v36 = vmax.f32 %v47_v30, 0.0  ;;  %v52_v37 = vmax.f32 %v48_v31, 0.0 }
  0x16   :  { %345 = vmatpush.bf16.msra.mxu2 %v537_v10  ;;  %v46_v28 = vld [vmem:[#allocation2 + $0x8] sm:$0xff]  ;;  %v524_v35 = vld [vmem:[#allocation5 + $0x40] sm:$0xff]  ;;  %v53_v40 = vpack.c.bf16 %v49_v32, %v49_v32 }
  0x17   :  { %358 = vmatpush.bf16.msra.mxu3 %v545_v11  ;;  %v541_v29 = vld [vmem:[#allocation5 + $0xc8] sm:$0xff]  ;;  %v50_v33 = vmax.f32 %v46_v28, 0.0  ;;  %v532_v38 = vld [vmem:[#allocation5 + $0x80] sm:$0xff]  ;;  %v55_v42 = vpack.c.bf16 %v51_v36, %v51_v36  ;;  %v56_v43 = vpack.c.bf16 %v52_v37, %v52_v37 }
  0x18   :  { %320 = vmatpush.bf16.msra.mxu0 %v520_v12  ;;  %v540_v39 = vld [vmem:[#allocation5 + $0xc0] sm:$0xff] }
  0x19   :  { %333 = vmatpush.bf16.msra.mxu1 %v528_v13  ;;  %v54_v41 = vpack.c.bf16 %v50_v33, %v50_v33  ;;  %v553_v44 = vld [vmem:[%s671_s2] ss:$0 sm:$0xff] }
  0x1a   :  { %346 = vmatpush.bf16.msra.mxu2 %v536_v14 }
  0x1b   :  { %359 = vmatpush.bf16.msra.mxu3 %v544_v15 }
  0x1c   :  { %321 = vmatpush.bf16.msra.mxu0 %v519_v16 }
  0x1d   :  { %334 = vmatpush.bf16.msra.mxu1 %v527_v17 }
  0x1e   :  { %347 = vmatpush.bf16.msra.mxu2 %v535_v18 }
  0x1f   :  { %360 = vmatpush.bf16.msra.mxu3 %v543_v19 }
  0x20   :  { %322 = vmatpush.bf16.msra.mxu0 %v518_v20 }
  0x21   :  { %335 = vmatpush.bf16.msra.mxu1 %v526_v21 }
  0x22   :  { %348 = vmatpush.bf16.msra.mxu2 %v534_v22 }
  0x23   :  { %361 = vmatpush.bf16.msra.mxu3 %v542_v23 }
  0x24   :  { %323 = vmatpush.bf16.msra.mxu0 %v517_v24 }
  0x25   :  { %336 = vmatpush.bf16.msra.mxu1 %v525_v25 }
  0x26   :  { %349 = vmatpush.bf16.msra.mxu2 %v533_v26 }
  0x27   :  { %362 = vmatpush.bf16.msra.mxu3 %v541_v29 }
  0x28   :  { %324 = vmatpush.bf16.msra.mxu0 %v516_v34 }
  0x29   :  { %337 = vmatpush.bf16.msra.mxu1 %v524_v35 }
  0x2a   :  { %350 = vmatpush.bf16.msra.mxu2 %v532_v38 }
  0x2b   :  { %363 = vmatpush.bf16.msra.mxu3 %v540_v39  ;;  %325 = vmatmul.bf16.vlgmr.msra.gmra.mxu0 %v53_v40 }
  0x2c   :  { %338 = vmatmul.bf16.vlgmr.msra.gmra.mxu1 %v54_v41 }
  0x2d   :  { %351 = vmatmul.bf16.vlgmr.msra.gmra.mxu2 %v55_v42 }
  0x2e   :  { %364 = vmatmul.bf16.vlgmr.msra.gmra.mxu3 %v56_v43 }
  0xa8   :  { %v326_v45 = vpop.f32.mrf.mxu0 }
  0xa9   :  { %v339_v46 = vpop.f32.mrf.mxu1  ;;  %v327_v47 = vadd.f32 %v553_v44, %v326_v45 }
  0xab   :  { %v340_v48 = vadd.f32 %v339_v46, %v327_v47 }
  0xb0   :  { %v352_v49 = vpop.f32.mrf.mxu2  ;;  %v328_v52 = vpop.f32.mrf.mxu0 }
  0xb1   :  { %v365_v50 = vpop.f32.mrf.mxu3  ;;  %v353_v51 = vadd.f32 %v352_v49, %v340_v48  ;;  %v341_v53 = vpop.f32.mrf.mxu1 }
  0xb3   :  { %v366_v54 = vadd.f32 %v365_v50, %v353_v51 }
  0xb5   :  { %369 = vst [vmem:[#allocation7] sm:$0xff] %v366_v54 }
  0xb6   :  { %380 = dma.vmem_to_hbm [thread:$0]  %s376_s25, 128, %s378_s28, [#allocation4]  }
  0xb8   :  { %v354_v55 = vpop.f32.mrf.mxu2 }
  0xb9   :  { %v367_v56 = vpop.f32.mrf.mxu3 }
  0xba   :  { %630 = dma.done.wait [#allocation4], 128  }
  0xbb   :  { %631 = vsyncadd [#allocation4], 4294967168 }
  0xbc   :  { %385 = vsyncpa [#allocation3], 1 }
  0xbd   :  { %386 = vsyncpa [#allocation6], 1 }
  0xbe   :  { %387 = vsyncpa [#allocation4], 1 }

</bundles_post_ra>
